<compile_context>
chip_gen: v7x
topology: tpu7x:2x2x1
jax: 0.10.0
libtpu: 0.0.40
codegen_flags: <defaults>
</compile_context>

<pallas_src>
import functools

import jax
import jax.numpy as jnp
import numpy as np
from jax.experimental import pallas as pl
from jax.experimental.pallas import tpu as pltpu


_SQRT_HALF = 0.7071067811865476


def _recip(x):
    # approximate reciprocal on the EUP slot + one Newton step (~f32 accurate)
    r = pl.reciprocal(x, approx=True)
    return r * (2.0 - x * r)


def _erf(x):
    # Abramowitz & Stegun 7.1.26 rational approximation (max abs err ~1.5e-7);
    # built only from exp / mul / add / where so it lowers cleanly in Mosaic.
    a1, a2, a3, a4, a5 = (0.254829592, -0.284496736, 1.421413741,
                          -1.453152027, 1.061405429)
    p = 0.3275911
    ax = jnp.abs(x)
    t = _recip(1.0 + p * ax)
    poly = ((((a5 * t + a4) * t + a3) * t + a2) * t + a1) * t
    e = 1.0 - poly * jnp.exp(-ax * ax)
    return jnp.where(x < 0.0, -e, e)


def _gelu_exact(x):
    # torch nn.GELU() default (erf form)
    return 0.5 * x * (1.0 + _erf(x * _SQRT_HALF))


def _softplus(x):
    # numerically stable softplus
    return jnp.maximum(x, 0.0) + jnp.log1p(jnp.exp(-jnp.abs(x)))


def density_kernel(zT_ref, yT_ref, wT_ref, b_ref, o_ref, *,
                   n_knots, min_likelihood):
    K = n_knots
    bin_w = 1.0 / (K - 1)            # uniform knot spacing (learn_bin_widths=False)
    inv_bin_w = float(K - 1)

    # ---- get_heights: softplus(Linear(GELU(z))) clipped at min_likelihood ----
    gz = _gelu_exact(zT_ref[...])                                    # (C, TB)
    h = jnp.dot(wT_ref[...], gz,
                preferred_element_type=jnp.float32) + b_ref[...]     # (K, TB)
    kh = jnp.maximum(_softplus(h), min_likelihood)                   # (K, TB)

    # ---- trapezoid integral over uniform bins, normalize heights ----
    total = jnp.sum(kh, axis=0, keepdims=True)                       # (1, TB)
    integral = bin_w * (total - 0.5 * (kh[0:1, :] + kh[K - 1:K, :]))
    khn = kh * _recip(integral)                                      # (K, TB)

    # ---- clip y to [0, 1 - 1e-5] and piecewise-linear interp --------------
    yc = jnp.clip(yT_ref[...], 0.0, 1.0 - 1e-5)                      # (D, TB)

    def bin_params(i):
        hl = khn[i:i + 1, :]                                         # (1, TB)
        hr = khn[i + 1:i + 2, :]                                     # (1, TB)
        slope = (hr - hl) * inv_bin_w                                # (1, TB)
        icpt = hl - (i * bin_w) * slope                              # (1, TB)
        return slope, icpt

    # value in bin i is yc*slope_i + icpt_i; ascending thresholds so the last
    # satisfied `yc >= k_i` wins == the unique containing bin.
    slope0, icpt0 = bin_params(0)
    out = yc * slope0 + icpt0                                        # (D, TB)
    for i in range(1, K - 1):
        slope, icpt = bin_params(i)
        out = jnp.where(yc >= i * bin_w, yc * slope + icpt, out)
    o_ref[...] = out


def conditional_piecewise_linear_density(z, y, weight, bias, knot_pos, *,
                                         min_likelihood=0.01, tile_b=None):
    B, C = z.shape
    B2, D = y.shape
    assert B == B2
    K = int(knot_pos.shape[0])
    assert weight.shape == (C, K)

    # Kernel bakes the fixed knot geometry in as constants; verify the module
    # default (uniform bins, learn_bin_widths=False).
    kp_np = np.asarray(knot_pos, dtype=np.float32)
    assert np.allclose(kp_np, np.linspace(0.0, 1.0, K, dtype=np.float32),
                       atol=1e-5), "kernel assumes uniform knot positions"
    # TODO(synk): learn_bin_widths=True / non-uniform bin_width_init would need
    # per-row knot positions inside the kernel; not implemented here.

    if tile_b is None:
        tile_b = min(max(pl.cdiv(B, 128), 1) * 128, 1024)
    assert tile_b % 128 == 0, "tile_b must be a multiple of 128 (lane width)"

    Bp = pl.cdiv(B, tile_b) * tile_b
    if Bp != B:
        z = jnp.pad(z, ((0, Bp - B), (0, 0)))
        y = jnp.pad(y, ((0, Bp - B), (0, 0)))   # pad with 0.0 (a valid y)

    # Batch on the lane axis.
    zT = jnp.transpose(z).astype(jnp.float32)          # (C, Bp)
    yT = jnp.transpose(y).astype(jnp.float32)          # (D, Bp)
    wT = jnp.transpose(weight).astype(jnp.float32)     # (K, C)
    b2 = bias.reshape(K, 1).astype(jnp.float32)        # (K, 1)

    kern = functools.partial(density_kernel, n_knots=K,
                             min_likelihood=float(min_likelihood))

    outT = pl.pallas_call(
        kern,
        out_shape=jax.ShapeDtypeStruct((D, Bp), jnp.float32),
        grid=(Bp // tile_b,),
        in_specs=[
            pl.BlockSpec((C, tile_b), lambda i: (0, i)),   # z^T
            pl.BlockSpec((D, tile_b), lambda i: (0, i)),   # y^T
            pl.BlockSpec((K, C), lambda i: (0, 0)),        # W^T (resident)
            pl.BlockSpec((K, 1), lambda i: (0, 0)),        # bias (resident)
        ],
        out_specs=pl.BlockSpec((D, tile_b), lambda i: (0, i)),   # lane-dense
        compiler_params=pltpu.CompilerParams(
            dimension_semantics=("parallel",)),
    )(zT, yT, wT, b2)

    return jnp.transpose(outT[:, :B])                    # (B, D)


def reference(z, y, weight, bias, knot_pos, min_likelihood=0.01):
    """Pure-JAX mirror of the PyTorch forward (for validation)."""
    gz = jax.nn.gelu(z, approximate=False)
    h = gz @ weight + bias
    kh = jnp.maximum(jax.nn.softplus(h), min_likelihood)
    kp = jnp.broadcast_to(knot_pos[None, :], kh.shape)
    kl, kr = kp[:, :-1], kp[:, 1:]
    hl, hr = kh[:, :-1], kh[:, 1:]
    integral = (0.5 * (kr - kl) * (hr + hl)).sum(axis=1, keepdims=True)
    khn = kh / integral
    yc = jnp.clip(y, kp.min(axis=1, keepdims=True),
                  kp.max(axis=1, keepdims=True) - 1e-5)
    mask = (yc[:, :, None] >= kl[:, None, :]) & (yc[:, :, None] < kr[:, None, :])
    sel_kl = (mask * kl[:, None, :]).sum(-1)
    sel_kr = (mask * kr[:, None, :]).sum(-1)
    sel_hl = (mask * khn[:, :-1][:, None, :]).sum(-1)
    sel_hr = (mask * khn[:, 1:][:, None, :]).sum(-1)
    slope = (sel_hr - sel_hl) / (sel_kr - sel_kl)
    return (yc - sel_kl) * slope + sel_hl


if __name__ == "__main__":
    # batch (deliberately not a multiple of 128 to exercise padding),
    # condition_dim, y-dim, n_knots
    B, C, D, K = 500, 32, 16, 8

    key = jax.random.PRNGKey(0)
    kw, kb, kz, ky = jax.random.split(key, 4)

    # Deterministic parameter init matching the module's _init_bins:
    #   weight ~ randn / 10  (stored here as (in, out) = (C, K))
    #   bias   = softplus_inverse(ones(K)) + randn * 0.01
    weight = jax.random.normal(kw, (C, K), jnp.float32) / 10.0
    bias = (jnp.log(jnp.expm1(jnp.ones((K,), jnp.float32)))
            + jax.random.normal(kb, (K,), jnp.float32) * 0.01)

    # learn_bin_widths=False: knot_pos = pad(cumsum(full(K-1, 1/(K-1))), (1,0))
    width_init = jnp.full((K - 1,), 1.0 / (K - 1), jnp.float32)
    knot_pos = jnp.concatenate(
        [jnp.zeros((1,), jnp.float32), jnp.cumsum(width_init)])

    z = jax.random.normal(kz, (B, C), jnp.float32)
    y = jax.random.uniform(ky, (B, D), jnp.float32)   # targets in [0, 1)

    out = conditional_piecewise_linear_density(z, y, weight, bias, knot_pos,
                                               tile_b=128)   # grid=(4,)
    out = jax.block_until_ready(out)

    ref = reference(z, y, weight, bias, knot_pos)
    np.testing.assert_allclose(np.asarray(out), np.asarray(ref),
                               rtol=2e-3, atol=2e-3)

    print("KERNEL_OK")
</pallas_src>

<mosaic_0001>
module attributes {stable_mosaic.version = 11 : i64} {
  func.func @density_kernel(%arg0: i32, %arg1: memref<32x128xf32, #tpu.memory_space<vmem>>, %arg2: memref<16x128xf32, #tpu.memory_space<vmem>>, %arg3: memref<8x32xf32, #tpu.memory_space<vmem>>, %arg4: memref<8x1xf32, #tpu.memory_space<vmem>>, %arg5: memref<16x128xf32, #tpu.memory_space<vmem>>) attributes {dimension_semantics = [#tpu.dimension_semantics<parallel>], iteration_bounds = array<i64: 4>, scalar_prefetch = 0 : i64, scratch_operands = 0 : i64, tpu.core_type = #tpu.core_type<tc>, window_params = [{transform_indices = @transform_0, window_bounds = array<i64: 32, 128>}, {transform_indices = @transform_1, window_bounds = array<i64: 16, 128>}, {pipeline_mode = #tpu.pipeline_mode<synchronous>, transform_indices = @transform_2, window_bounds = array<i64: 8, 32>}, {pipeline_mode = #tpu.pipeline_mode<synchronous>, transform_indices = @transform_3, window_bounds = array<i64: 8, 1>}, {transform_indices = @transform_4, window_bounds = array<i64: 16, 128>}]} {
    %c0 = arith.constant 0 : index
    %c0_0 = arith.constant 0 : index
    %0 = vector.load %arg1[%c0, %c0_0] : memref<32x128xf32, #tpu.memory_space<vmem>>, vector<32x128xf32>
    %cst = arith.constant 5.000000e-01 : f32
    %1 = vector.broadcast %cst : f32 to vector<32x128xf32>
    %2 = arith.mulf %1, %0 : vector<32x128xf32>
    %cst_1 = arith.constant 0.707106769 : f32
    %3 = vector.broadcast %cst_1 : f32 to vector<32x128xf32>
    %4 = arith.mulf %0, %3 : vector<32x128xf32>
    %5 = math.absf %4 : vector<32x128xf32>
    %cst_2 = arith.constant 0.327591091 : f32
    %6 = vector.broadcast %cst_2 : f32 to vector<32x128xf32>
    %7 = arith.mulf %6, %5 : vector<32x128xf32>
    %cst_3 = arith.constant 1.000000e+00 : f32
    %8 = vector.broadcast %cst_3 : f32 to vector<32x128xf32>
    %9 = arith.addf %8, %7 : vector<32x128xf32>
    %10 = tpu.reciprocal %9 {approx = true} : vector<32x128xf32> -> vector<32x128xf32>
    %11 = arith.mulf %9, %10 : vector<32x128xf32>
    %cst_4 = arith.constant 2.000000e+00 : f32
    %12 = vector.broadcast %cst_4 : f32 to vector<32x128xf32>
    %13 = arith.subf %12, %11 : vector<32x128xf32>
    %14 = arith.mulf %10, %13 : vector<32x128xf32>
    %cst_5 = arith.constant 1.06140542 : f32
    %15 = vector.broadcast %cst_5 : f32 to vector<32x128xf32>
    %16 = arith.mulf %15, %14 : vector<32x128xf32>
    %cst_6 = arith.constant -1.45315206 : f32
    %17 = vector.broadcast %cst_6 : f32 to vector<32x128xf32>
    %18 = arith.addf %16, %17 : vector<32x128xf32>
    %19 = arith.mulf %18, %14 : vector<32x128xf32>
    %cst_7 = arith.constant 1.42141378 : f32
    %20 = vector.broadcast %cst_7 : f32 to vector<32x128xf32>
    %21 = arith.addf %19, %20 : vector<32x128xf32>
    %22 = arith.mulf %21, %14 : vector<32x128xf32>
    %cst_8 = arith.constant -0.284496725 : f32
    %23 = vector.broadcast %cst_8 : f32 to vector<32x128xf32>
    %24 = arith.addf %22, %23 : vector<32x128xf32>
    %25 = arith.mulf %24, %14 : vector<32x128xf32>
    %cst_9 = arith.constant 0.254829586 : f32
    %26 = vector.broadcast %cst_9 : f32 to vector<32x128xf32>
    %27 = arith.addf %25, %26 : vector<32x128xf32>
    %28 = arith.mulf %27, %14 : vector<32x128xf32>
    %cst_10 = arith.constant 0.000000e+00 : f32
    %29 = vector.broadcast %cst_10 : f32 to vector<32x128xf32>
    %30 = arith.subf %29, %5 : vector<32x128xf32>
    %31 = arith.mulf %30, %5 : vector<32x128xf32>
    %32 = math.exp %31 : vector<32x128xf32>
    %33 = arith.mulf %28, %32 : vector<32x128xf32>
    %cst_11 = arith.constant 1.000000e+00 : f32
    %34 = vector.broadcast %cst_11 : f32 to vector<32x128xf32>
    %35 = arith.subf %34, %33 : vector<32x128xf32>
    %cst_12 = arith.constant 0.000000e+00 : f32
    %36 = vector.broadcast %cst_12 : f32 to vector<32x128xf32>
    %37 = arith.cmpf olt, %4, %36 : vector<32x128xf32>
    %cst_13 = arith.constant 0.000000e+00 : f32
    %38 = vector.broadcast %cst_13 : f32 to vector<32x128xf32>
    %39 = arith.subf %38, %35 : vector<32x128xf32>
    %40 = arith.select %37, %39, %35 : vector<32x128xi1>, vector<32x128xf32>
    %cst_14 = arith.constant 1.000000e+00 : f32
    %41 = vector.broadcast %cst_14 : f32 to vector<32x128xf32>
    %42 = arith.addf %41, %40 : vector<32x128xf32>
    %43 = arith.mulf %2, %42 : vector<32x128xf32>
    %c0_15 = arith.constant 0 : index
    %c0_16 = arith.constant 0 : index
    %44 = vector.load %arg3[%c0_15, %c0_16] : memref<8x32xf32, #tpu.memory_space<vmem>>, vector<8x32xf32>
    %cst_17 = arith.constant dense<0.000000e+00> : vector<8x128xf32>
    %45 = tpu.matmul %44, %43, %cst_17 {dimension_numbers = #tpu.dot_dimension_numbers<[1], [0], [0], [1], [0, 0, 1, 1], [], []>} : vector<8x32xf32>, vector<32x128xf32>, vector<8x128xf32> -> vector<8x128xf32>
    %c0_18 = arith.constant 0 : index
    %c0_19 = arith.constant 0 : index
    %46 = vector.load %arg4[%c0_18, %c0_19] : memref<8x1xf32, #tpu.memory_space<vmem>>, vector<8x1xf32>
    %47 = vector.broadcast %46 : vector<8x1xf32> to vector<8x128xf32>
    %48 = arith.addf %45, %47 : vector<8x128xf32>
    %cst_20 = arith.constant 0.000000e+00 : f32
    %49 = vector.broadcast %cst_20 : f32 to vector<8x128xf32>
    %50 = arith.maximumf %48, %49 : vector<8x128xf32>
    %51 = math.absf %48 : vector<8x128xf32>
    %cst_21 = arith.constant 0.000000e+00 : f32
    %52 = vector.broadcast %cst_21 : f32 to vector<8x128xf32>
    %53 = arith.subf %52, %51 : vector<8x128xf32>
    %54 = math.exp %53 : vector<8x128xf32>
    %55 = math.log1p %54 : vector<8x128xf32>
    %56 = arith.addf %50, %55 : vector<8x128xf32>
    %cst_22 = arith.constant 0.00999999977 : f32
    %57 = vector.broadcast %cst_22 : f32 to vector<8x128xf32>
    %58 = arith.maximumf %56, %57 : vector<8x128xf32>
    %cst_23 = arith.constant dense<0.000000e+00> : vector<128xf32>
    %59 = vector.multi_reduction <add>, %58, %cst_23 [0] : vector<8x128xf32> to vector<128xf32>
    %60 = vector.shape_cast %59 : vector<128xf32> to vector<1x128xf32>
    %61 = vector.extract_strided_slice %58 {offsets = [0, 0], sizes = [1, 128], strides = [1, 1]} : vector<8x128xf32> to vector<1x128xf32>
    %62 = vector.extract_strided_slice %58 {offsets = [7, 0], sizes = [1, 128], strides = [1, 1]} : vector<8x128xf32> to vector<1x128xf32>
    %63 = arith.addf %61, %62 : vector<1x128xf32>
    %cst_24 = arith.constant 5.000000e-01 : f32
    %64 = vector.broadcast %cst_24 : f32 to vector<1x128xf32>
    %65 = arith.mulf %64, %63 : vector<1x128xf32>
    %66 = arith.subf %60, %65 : vector<1x128xf32>
    %cst_25 = arith.constant 0.142857149 : f32
    %67 = vector.broadcast %cst_25 : f32 to vector<1x128xf32>
    %68 = arith.mulf %67, %66 : vector<1x128xf32>
    %69 = tpu.reciprocal %68 {approx = true} : vector<1x128xf32> -> vector<1x128xf32>
    %70 = arith.mulf %68, %69 : vector<1x128xf32>
    %cst_26 = arith.constant 2.000000e+00 : f32
    %71 = vector.broadcast %cst_26 : f32 to vector<1x128xf32>
    %72 = arith.subf %71, %70 : vector<1x128xf32>
    %73 = arith.mulf %69, %72 : vector<1x128xf32>
    %74 = vector.broadcast %73 : vector<1x128xf32> to vector<8x128xf32>
    %75 = arith.mulf %58, %74 : vector<8x128xf32>
    %c0_27 = arith.constant 0 : index
    %c0_28 = arith.constant 0 : index
    %76 = vector.load %arg2[%c0_27, %c0_28] : memref<16x128xf32, #tpu.memory_space<vmem>>, vector<16x128xf32>
    %cst_29 = arith.constant 0.000000e+00 : f32
    %cst_30 = arith.constant 0.999989986 : f32
    %77 = vector.broadcast %cst_29 : f32 to vector<16x128xf32>
    %78 = arith.maximumf %77, %76 : vector<16x128xf32>
    %79 = vector.broadcast %cst_30 : f32 to vector<16x128xf32>
    %80 = arith.minimumf %79, %78 : vector<16x128xf32>
    %81 = vector.extract_strided_slice %75 {offsets = [0, 0], sizes = [1, 128], strides = [1, 1]} : vector<8x128xf32> to vector<1x128xf32>
    %82 = vector.extract_strided_slice %75 {offsets = [1, 0], sizes = [1, 128], strides = [1, 1]} : vector<8x128xf32> to vector<1x128xf32>
    %83 = arith.subf %82, %81 : vector<1x128xf32>
    %cst_31 = arith.constant 7.000000e+00 : f32
    %84 = vector.broadcast %cst_31 : f32 to vector<1x128xf32>
    %85 = arith.mulf %83, %84 : vector<1x128xf32>
    %cst_32 = arith.constant 0.000000e+00 : f32
    %86 = vector.broadcast %cst_32 : f32 to vector<1x128xf32>
    %87 = arith.mulf %86, %85 : vector<1x128xf32>
    %88 = arith.subf %81, %87 : vector<1x128xf32>
    %89 = vector.broadcast %85 : vector<1x128xf32> to vector<16x128xf32>
    %90 = arith.mulf %80, %89 : vector<16x128xf32>
    %91 = vector.broadcast %88 : vector<1x128xf32> to vector<16x128xf32>
    %92 = arith.addf %90, %91 : vector<16x128xf32>
    %93 = vector.extract_strided_slice %75 {offsets = [1, 0], sizes = [1, 128], strides = [1, 1]} : vector<8x128xf32> to vector<1x128xf32>
    %94 = vector.extract_strided_slice %75 {offsets = [2, 0], sizes = [1, 128], strides = [1, 1]} : vector<8x128xf32> to vector<1x128xf32>
    %95 = arith.subf %94, %93 : vector<1x128xf32>
    %cst_33 = arith.constant 7.000000e+00 : f32
    %96 = vector.broadcast %cst_33 : f32 to vector<1x128xf32>
    %97 = arith.mulf %95, %96 : vector<1x128xf32>
    %cst_34 = arith.constant 0.142857149 : f32
    %98 = vector.broadcast %cst_34 : f32 to vector<1x128xf32>
    %99 = arith.mulf %98, %97 : vector<1x128xf32>
    %100 = arith.subf %93, %99 : vector<1x128xf32>
    %cst_35 = arith.constant 0.142857149 : f32
    %101 = vector.broadcast %cst_35 : f32 to vector<16x128xf32>
    %102 = arith.cmpf oge, %80, %101 : vector<16x128xf32>
    %103 = vector.broadcast %97 : vector<1x128xf32> to vector<16x128xf32>
    %104 = arith.mulf %80, %103 : vector<16x128xf32>
    %105 = vector.broadcast %100 : vector<1x128xf32> to vector<16x128xf32>
    %106 = arith.addf %104, %105 : vector<16x128xf32>
    %107 = arith.select %102, %106, %92 : vector<16x128xi1>, vector<16x128xf32>
    %108 = vector.extract_strided_slice %75 {offsets = [2, 0], sizes = [1, 128], strides = [1, 1]} : vector<8x128xf32> to vector<1x128xf32>
    %109 = vector.extract_strided_slice %75 {offsets = [3, 0], sizes = [1, 128], strides = [1, 1]} : vector<8x128xf32> to vector<1x128xf32>
    %110 = arith.subf %109, %108 : vector<1x128xf32>
    %cst_36 = arith.constant 7.000000e+00 : f32
    %111 = vector.broadcast %cst_36 : f32 to vector<1x128xf32>
    %112 = arith.mulf %110, %111 : vector<1x128xf32>
    %cst_37 = arith.constant 0.285714298 : f32
    %113 = vector.broadcast %cst_37 : f32 to vector<1x128xf32>
    %114 = arith.mulf %113, %112 : vector<1x128xf32>
    %115 = arith.subf %108, %114 : vector<1x128xf32>
    %cst_38 = arith.constant 0.285714298 : f32
    %116 = vector.broadcast %cst_38 : f32 to vector<16x128xf32>
    %117 = arith.cmpf oge, %80, %116 : vector<16x128xf32>
    %118 = vector.broadcast %112 : vector<1x128xf32> to vector<16x128xf32>
    %119 = arith.mulf %80, %118 : vector<16x128xf32>
    %120 = vector.broadcast %115 : vector<1x128xf32> to vector<16x128xf32>
    %121 = arith.addf %119, %120 : vector<16x128xf32>
    %122 = arith.select %117, %121, %107 : vector<16x128xi1>, vector<16x128xf32>
    %123 = vector.extract_strided_slice %75 {offsets = [3, 0], sizes = [1, 128], strides = [1, 1]} : vector<8x128xf32> to vector<1x128xf32>
    %124 = vector.extract_strided_slice %75 {offsets = [4, 0], sizes = [1, 128], strides = [1, 1]} : vector<8x128xf32> to vector<1x128xf32>
    %125 = arith.subf %124, %123 : vector<1x128xf32>
    %cst_39 = arith.constant 7.000000e+00 : f32
    %126 = vector.broadcast %cst_39 : f32 to vector<1x128xf32>
    %127 = arith.mulf %125, %126 : vector<1x128xf32>
    %cst_40 = arith.constant 0.428571433 : f32
    %128 = vector.broadcast %cst_40 : f32 to vector<1x128xf32>
    %129 = arith.mulf %128, %127 : vector<1x128xf32>
    %130 = arith.subf %123, %129 : vector<1x128xf32>
    %cst_41 = arith.constant 0.428571433 : f32
    %131 = vector.broadcast %cst_41 : f32 to vector<16x128xf32>
    %132 = arith.cmpf oge, %80, %131 : vector<16x128xf32>
    %133 = vector.broadcast %127 : vector<1x128xf32> to vector<16x128xf32>
    %134 = arith.mulf %80, %133 : vector<16x128xf32>
    %135 = vector.broadcast %130 : vector<1x128xf32> to vector<16x128xf32>
    %136 = arith.addf %134, %135 : vector<16x128xf32>
    %137 = arith.select %132, %136, %122 : vector<16x128xi1>, vector<16x128xf32>
    %138 = vector.extract_strided_slice %75 {offsets = [4, 0], sizes = [1, 128], strides = [1, 1]} : vector<8x128xf32> to vector<1x128xf32>
    %139 = vector.extract_strided_slice %75 {offsets = [5, 0], sizes = [1, 128], strides = [1, 1]} : vector<8x128xf32> to vector<1x128xf32>
    %140 = arith.subf %139, %138 : vector<1x128xf32>
    %cst_42 = arith.constant 7.000000e+00 : f32
    %141 = vector.broadcast %cst_42 : f32 to vector<1x128xf32>
    %142 = arith.mulf %140, %141 : vector<1x128xf32>
    %cst_43 = arith.constant 0.571428597 : f32
    %143 = vector.broadcast %cst_43 : f32 to vector<1x128xf32>
    %144 = arith.mulf %143, %142 : vector<1x128xf32>
    %145 = arith.subf %138, %144 : vector<1x128xf32>
    %cst_44 = arith.constant 0.571428597 : f32
    %146 = vector.broadcast %cst_44 : f32 to vector<16x128xf32>
    %147 = arith.cmpf oge, %80, %146 : vector<16x128xf32>
    %148 = vector.broadcast %142 : vector<1x128xf32> to vector<16x128xf32>
    %149 = arith.mulf %80, %148 : vector<16x128xf32>
    %150 = vector.broadcast %145 : vector<1x128xf32> to vector<16x128xf32>
    %151 = arith.addf %149, %150 : vector<16x128xf32>
    %152 = arith.select %147, %151, %137 : vector<16x128xi1>, vector<16x128xf32>
    %153 = vector.extract_strided_slice %75 {offsets = [5, 0], sizes = [1, 128], strides = [1, 1]} : vector<8x128xf32> to vector<1x128xf32>
    %154 = vector.extract_strided_slice %75 {offsets = [6, 0], sizes = [1, 128], strides = [1, 1]} : vector<8x128xf32> to vector<1x128xf32>
    %155 = arith.subf %154, %153 : vector<1x128xf32>
    %cst_45 = arith.constant 7.000000e+00 : f32
    %156 = vector.broadcast %cst_45 : f32 to vector<1x128xf32>
    %157 = arith.mulf %155, %156 : vector<1x128xf32>
    %cst_46 = arith.constant 0.714285731 : f32
    %158 = vector.broadcast %cst_46 : f32 to vector<1x128xf32>
    %159 = arith.mulf %158, %157 : vector<1x128xf32>
    %160 = arith.subf %153, %159 : vector<1x128xf32>
    %cst_47 = arith.constant 0.714285731 : f32
    %161 = vector.broadcast %cst_47 : f32 to vector<16x128xf32>
    %162 = arith.cmpf oge, %80, %161 : vector<16x128xf32>
    %163 = vector.broadcast %157 : vector<1x128xf32> to vector<16x128xf32>
    %164 = arith.mulf %80, %163 : vector<16x128xf32>
    %165 = vector.broadcast %160 : vector<1x128xf32> to vector<16x128xf32>
    %166 = arith.addf %164, %165 : vector<16x128xf32>
    %167 = arith.select %162, %166, %152 : vector<16x128xi1>, vector<16x128xf32>
    %168 = vector.extract_strided_slice %75 {offsets = [6, 0], sizes = [1, 128], strides = [1, 1]} : vector<8x128xf32> to vector<1x128xf32>
    %169 = vector.extract_strided_slice %75 {offsets = [7, 0], sizes = [1, 128], strides = [1, 1]} : vector<8x128xf32> to vector<1x128xf32>
    %170 = arith.subf %169, %168 : vector<1x128xf32>
    %cst_48 = arith.constant 7.000000e+00 : f32
    %171 = vector.broadcast %cst_48 : f32 to vector<1x128xf32>
    %172 = arith.mulf %170, %171 : vector<1x128xf32>
    %cst_49 = arith.constant 0.857142865 : f32
    %173 = vector.broadcast %cst_49 : f32 to vector<1x128xf32>
    %174 = arith.mulf %173, %172 : vector<1x128xf32>
    %175 = arith.subf %168, %174 : vector<1x128xf32>
    %cst_50 = arith.constant 0.857142865 : f32
    %176 = vector.broadcast %cst_50 : f32 to vector<16x128xf32>
    %177 = arith.cmpf oge, %80, %176 : vector<16x128xf32>
    %178 = vector.broadcast %172 : vector<1x128xf32> to vector<16x128xf32>
    %179 = arith.mulf %80, %178 : vector<16x128xf32>
    %180 = vector.broadcast %175 : vector<1x128xf32> to vector<16x128xf32>
    %181 = arith.addf %179, %180 : vector<16x128xf32>
    %182 = arith.select %177, %181, %167 : vector<16x128xi1>, vector<16x128xf32>
    %c0_51 = arith.constant 0 : index
    %c0_52 = arith.constant 0 : index
    %183 = vector.load %arg5[%c0_51, %c0_52] : memref<16x128xf32, #tpu.memory_space<vmem>>, vector<16x128xf32>
    tpu.vector_store %arg5[%c0_51, %c0_52], %182 {strides = array<i32>} : memref<16x128xf32, #tpu.memory_space<vmem>>, vector<16x128xf32>,
    return
  }
  func.func @transform_0(%arg0: i32) -> (i32, i32) {
    %c0_i32 = arith.constant 0 : i32
    %c0_i32_0 = arith.constant 0 : i32
    return %c0_i32, %arg0 : i32, i32
  }
  func.func @transform_1(%arg0: i32) -> (i32, i32) {
    %c0_i32 = arith.constant 0 : i32
    %c0_i32_0 = arith.constant 0 : i32
    return %c0_i32, %arg0 : i32, i32
  }
  func.func @transform_2(%arg0: i32) -> (i32, i32) {
    %c0_i32 = arith.constant 0 : i32
    %c0_i32_0 = arith.constant 0 : i32
    %c0_i32_1 = arith.constant 0 : i32
    return %c0_i32, %c0_i32_0 : i32, i32
  }
  func.func @transform_3(%arg0: i32) -> (i32, i32) {
    %c0_i32 = arith.constant 0 : i32
    %c0_i32_0 = arith.constant 0 : i32
    %c0_i32_1 = arith.constant 0 : i32
    return %c0_i32, %c0_i32_0 : i32, i32
  }
  func.func @transform_4(%arg0: i32) -> (i32, i32) {
    %c0_i32 = arith.constant 0 : i32
    %c0_i32_0 = arith.constant 0 : i32
    return %c0_i32, %arg0 : i32, i32
  }
}

</mosaic_0001>

<bundles_post_ra>
// kernel: tpu_custom_call.1
= control target key start
LH: loop header
LB: loop body
LE: loop exit
PB: predicated region body
PF: predicated region fallthrough
CT: control target
= control target key end

     0   :  { %9 = vsyncpa [#allocation3], 0  ;;  %s1410_s0 = inlined_call_operand.hbm [shape: f32[32,512], index: 0, kind: input, shape index: {}]   ;;  %s1411_s1 = inlined_call_operand.hbm [shape: f32[16,512], index: 1, kind: input, shape index: {}]   ;;  %s1412_s2 = inlined_call_operand.vmem [shape: f32[8,32], index: 2, kind: input, shape index: {}]   ;;  %s1413_s3 = inlined_call_operand.vmem [shape: f32[8,1], index: 3, kind: input, shape index: {}]   ;;  %s1414_s4 = inlined_call_operand.hbm [shape: f32[16,512], index: 4, kind: output, shape index: {}]  }
   0x1   :  { %11 = vsyncpa [#allocation3 + $0x1], 0 }
   0x2   :  { %12 = vsyncpa [#allocation6], 0 }
   0x3   :  { %14 = vsyncpa [#allocation6 + $0x1], 0 }
   0x4   :  { %15 = vsyncpa [#allocation4], 0 }
   0x5   :  { %17 = vsyncpa [#allocation4 + $0x1], 0  ;;  %s1050_s15 = smov 0   ;;  %s1052_s16 = smov 0  }
   0x6   :  { %s1054_s17 = smov 0   ;;  %s1056_s18 = smov 0  }
   0x7 LB: > { %s1071_s19 = sadd.s32 4294967295, %s1010_s18   ;;  %s758_s20 = sadd.s32 4294967294, %s1010_s18   ;;  %s1010_s18 = sphi %s1056_s18, %s1432_s18   ;;  %s1006_s17 = sphi %s1054_s17, %s1431_s17   ;;  %s1002_s16 = sphi %s1052_s16, %s1430_s16   ;;  %s998_s15 = sphi %s1050_s15, %s1429_s15  }
   0x8   : > { %s1075_s21 = sadd.s32 1, %s1010_s18   ;;  %s30_s22 = sadd.s32 1, %s1006_s17 }
   0x9   : > { %s27_s23 = ssub.s32 %s1010_s18, %s1075_s21  ;;  %p37_p0 = scmp.ne.s32.totalorder %s1006_s17, %s1002_s16 }
   0xa   : > { %p28_p1 = scmp.eq.s32.totalorder %s27_s23, 0  ;;  %p38_p2 = scmp.eq.s32.totalorder %s1010_s18, 0 }
   0xb   : > { %p43_p3 = scmp.ne.s32.totalorder %s1002_s16, %s998_s15  ;;  %p44_p4 = scmp.eq.s32.totalorder %s1071_s19, 0 }
   0xc   : > { %s1087_s24 = scalar_select %p28_p1, %s1006_s17, %s30_s22  }
   0xd   : > { %p1089_p5 = por %p38_p2, %p37_p0  ;;  %p1093_p6 = por %p44_p4, %p43_p3 }
   0xe   : > { %p135_p7 = scmp.eq.s32.totalorder %s1071_s19, 3  ;;  %p141_p8 = scmp.eq.s32.totalorder %s758_s20, 3 }
   0xf   : > { %s1419_s26 = scalar_select %p1093_p6, 1, 0 }
  0x10   : > { %p813_p9 = scmp.lt.s32.totalorder %s1010_s18, 4  ;;  %p1099_p10 = por %p135_p7, %p37_p0 }
  0x11   : > { %p1103_p11 = por %p141_p8, %p43_p3  ;;  %s1108_s29 = sand.u32 1, %s1006_s17  }
  0x12   : > { %s1420_s27 = scalar_select %p1099_p10, 1, 0 }
  0x13   : > { %s1421_s28 = scalar_select %p1103_p11, 1, 0 }
  0x14   : > { %s762_s30 = sshll.u32 %s1010_s18, 7  ;;  %s761_s5 = sshll.u32 %s1108_s29, 5 }
  0x15   : > { %s1117_s8 = scalar_lea.hbm %s1410_s0, %s762_s30  ;;  %s171_s9 = scalar_lea.vmem [#allocation2], %s761_s5 }
  0x16   : > { %s177_s10 = sshll.u32 %s171_s9, 4  ;;  %p1121_p12 = pnand %p813_p9, %p1089_p5  ;;  %s1125_s10 = int_to_ptr.vmem [resolvable:$true] %s177_s10 }
  0x17   : > { %s168_s12 = scalar_lea.sflag [#allocation3], %s1108_s29  ;;  %s880_s13 = scalar_lea.hbm %s1117_s8, 512 }
  0x18   : > { %p881_p0 = scmp.ne.s32.totalorder %s1117_s8, %s880_s13  ;;  %p882_p1 = pneg %p1121_p12 }
  0x19   : > { %s885_s22 = scalar_lea.hbm %s1410_s0, 2048  ;;  %p886_p4 = scmp.lt.u32.totalorder %s1117_s8, %s1410_s0 }
  0x1a   : > { %p883_p2 = pnand %p882_p1, %p881_p0  ;;  %p887_p5 = scmp.lt.u32.totalorder %s885_s22, %s880_s13 }
  0x1b   : > { %p889_p8 = scmp.lt.u32.totalorder %s880_s13, %s1117_s8 }
  0x1c   : > { %p884_p3 = pneg %p883_p2  ;;  %p888_p7 = por %p887_p5, %p886_p4 }
  0x1e   : > { %p890_p9 = por %p889_p8, %p888_p7 }
  0x20   : > { %p891_p13 = pnand %p890_p9, %p884_p3 }
  0x22   : > { %894 = shalt.err (!%p891_p13)
}
  0x23   : > { %s895_s5 = scalar_lea.vmem %s1125_s10, 512  ;;  %s1012_s6 = smov [#allocation2]  }
  0x24   : > { %p896_p0 = scmp.ne.s32.totalorder %s1125_s10, %s895_s5  ;;  %s900_s7 = sshll.u32 %s1012_s6, 4  ;;  %s901_s7 = int_to_ptr.vmem [resolvable:$false] %s900_s7 }
  0x25   : > { %s902_s9 = scalar_lea.vmem %s901_s7, 1024  ;;  %p903_p10 = scmp.lt.s32.totalorder %s1125_s10, %s901_s7 }
  0x26   : > { %p898_p2 = pnand %p896_p0, %p882_p1  ;;  %p904_p4 = scmp.lt.s32.totalorder %s902_s9, %s895_s5 }
  0x28   : > { %p899_p11 = pneg %p898_p2  ;;  %p905_p5 = por %p904_p4, %p903_p10 }
  0x2a   : > { %p906_p7 = pnand %p905_p5, %p899_p11 }
  0x2c   : > { %909 = shalt.err (!%p906_p7)
}
  0x2d   : > { %s1416_s13 = smov 512   ;;  %s1014_s14 = smov 128  }
  0x2e   : > { %s1015_s20 = smov 8   ;;  %p205_p10 = scmp.lt.s32.totalorder %s1010_s18, 5 }
  0x2f   : > { %805 = dma.hbm_to_vmem [thread:$0]  (!%p1121_p12), %s1117_s8, 512, %s1125_s10, %s168_s12, %s1416_s13, %s1014_s14, %s1015_s20  }
  0x30   : > { %s763_s22 = sshll.u32 %s1108_s29, 4  ;;  %s1166_s5 = scalar_lea.hbm %s1411_s1, %s762_s30 }
  0x31   : > { %p1423_p11 = scmp.ge.s32.totalorder %s1010_s18, 1  ;;  %s191_s7 = scalar_lea.vmem [#allocation5], %s763_s22 }
  0x32   : > { %s197_s9 = sshll.u32 %s191_s7, 4  ;;  %s188_s8 = scalar_lea.sflag [#allocation6], %s1108_s29  ;;  %s1174_s9 = int_to_ptr.vmem [resolvable:$true] %s197_s9 }
  0x33   : > { %p1170_p13 = pnand %p1423_p11, %p205_p10  ;;  %s910_s10 = scalar_lea.hbm %s1166_s5, 256 }
  0x34   : > { %p911_p3 = scmp.ne.s32.totalorder %s1166_s5, %s910_s10  ;;  %s915_s23 = scalar_lea.hbm %s1411_s1, 1024 }
  0x35   : > { %p916_p0 = scmp.lt.u32.totalorder %s1166_s5, %s1411_s1  ;;  %p917_p2 = scmp.lt.u32.totalorder %s915_s23, %s910_s10 }
  0x36   : > { %p913_p8 = pnand %p911_p3, %p882_p1  ;;  %p919_p5 = scmp.lt.u32.totalorder %s910_s10, %s1166_s5 }
  0x37   : > { %p918_p4 = por %p917_p2, %p916_p0 }
  0x38   : > { %p914_p9 = pneg %p913_p8 }
  0x39   : > { %p920_p7 = por %p919_p5, %p918_p4 }
  0x3b   : > { %p921_p10 = pnand %p920_p7, %p914_p9 }
  0x3d   : > { %924 = shalt.err (!%p921_p10)
}
  0x3e   : > { %s925_s22 = scalar_lea.vmem %s1174_s9, 256  ;;  %s1016_s7 = smov [#allocation5]  }
  0x3f   : > { %p926_p11 = scmp.ne.s32.totalorder %s1174_s9, %s925_s22  ;;  %s930_s30 = sshll.u32 %s1016_s7, 4  ;;  %s931_s30 = int_to_ptr.vmem [resolvable:$false] %s930_s30 }
  0x40   : > { %s932_s13 = scalar_lea.vmem %s931_s30, 512  ;;  %p933_p6 = scmp.lt.s32.totalorder %s1174_s9, %s931_s30 }
  0x41   : > { %p928_p3 = pnand %p926_p11, %p882_p1  ;;  %p934_p0 = scmp.lt.s32.totalorder %s932_s13, %s925_s22 }
  0x43   : > { %p929_p8 = pneg %p928_p3  ;;  %p935_p2 = por %p934_p0, %p933_p6 }
  0x45   : > { %p936_p4 = pnand %p935_p2, %p929_p8 }
  0x47   : > { %939 = shalt.err (!%p936_p4)
}
  0x48   : > { %s1425_s10 = smov 512   ;;  %209 = sbr.rel (%p1170_p13) target bundleno = 481 (0x1e1), region = 36 }
  0x49   : > { %808 = dma.hbm_to_vmem [thread:$0]  (!%p1121_p12), %s1166_s5, 256, %s1174_s9, %s188_s8, %s1425_s10, %s1014_s14, %s1015_s20  }
  0x4a   : > { %s1208_s12 = sand.u32 (!%p1170_p13), 1, %s1002_s16   ;;  %p1426_p6 = scmp.ne.s32.totalorder (!%p1170_p13), %s1419_s26, 0 }
  0x4b   : > { %s766_s23 = sshll.u32 (!%p1170_p13), %s1208_s12, 5  ;;  %s212_s25 = scalar_lea.sflag (!%p1170_p13), [#allocation3], %s1208_s12 }
  0x4c   : > { %s215_s11 = scalar_lea.vmem (!%p1170_p13), [#allocation2], %s766_s23 }
  0x4f   : > { %985 = dma.done.wait (%p1426_p6), %s212_s25, 512  }
  0x50   : > { %987 = vsyncadd (%p1426_p6), %s212_s25, 4294966784  ;;  %s767_s29 = sshll.u32 %s1208_s12, 4  ;;  %s221_s14 = scalar_lea.sflag [#allocation6], %s1208_s12 }
  0x51   : > { %s1220_s20 = scalar_lea.vmem [#allocation5], %s767_s29 }
  0x52   : > { %989 = dma.done.wait (%p1426_p6), %s221_s14, 256  }
  0x53   : > { %991 = vsyncadd (%p1426_p6), %s221_s14, 4294967040  ;;  %v1017_v0 = vmov 0.0|0.0   ;;  %vm1018_vm0 = vmmov 0   ;;  %v1019_v1 = vmov 0.0   ;;  %v1020_v2 = vmov 0   ;;  %v1227_v3 = vld [vmem:[%s215_s11] sm:$0xff] }
  0x54   : > { %790 = vmatprep.subr.bf16.mxu0 %v1017_v0  ;;  %787 = vmatprep.mubr.msk.f32.mxu0 %vm1018_vm0, %v1019_v1  ;;  %v1229_v4 = vld [vmem:[%s215_s11 + $0x8] sm:$0xff]  ;;  %v1231_v5 = vld [vmem:[%s215_s11 + $0x10] sm:$0xff]  ;;  %v1234_v6 = vmul.f32 0.70710677, %v1227_v3  ;;  %v1239_v8 = vld [vmem:[%s215_s11 + $0x18] sm:$0xff]  ;;  %vm381_vm5 = vcmask 261120  }
  0x55   : > { %857 = vset.pattern.permute.xlu0 %v1020_v2  ;;  %v1237_v7 = vmul.f32 0.70710677, %v1229_v4  ;;  %v1242_v9 = vmul.f32 0.70710677, %v1231_v5  ;;  %v375_v10 = vld [vmem:[%s1413_s3] sm:$0xff]  ;;  %s771_s8 = sshll.u32 %s1071_s19, 7 }
  0x56   : > { %v266_v11 = vand.u32 2147483647, %v1234_v6  ;;  %378 = vperm.xlu0 %857, %v375_v10   ;;  %v1250_v13 = vmul.f32 0.70710677, %v1239_v8  ;;  %vm354_vm1 = vcmp.lt.f32.partialorder %v1234_v6, 0.0  ;;  %s253_s22 = scalar_lea.vmem [#allocation7], %s767_s29  ;;  %s1365_s13 = scalar_lea.hbm %s1414_s4, %s771_s8 }
  0x57   : > { %v267_v12 = vand.u32 2147483647, %v1237_v7  ;;  %v268_v14 = vand.u32 2147483647, %v1242_v9  ;;  %vm355_vm2 = vcmp.lt.f32.partialorder %v1237_v7, 0.0  ;;  %vm356_vm3 = vcmp.lt.f32.partialorder %v1242_v9, 0.0 }
  0x58   : > { %v270_v15 = vmul.f32 0.3275911, %v266_v11  ;;  %v269_v17 = vand.u32 2147483647, %v1250_v13  ;;  %v330_v25 = vsub.f32 0.0, %v266_v11  ;;  %vm357_vm4 = vcmp.lt.f32.partialorder %v1250_v13, 0.0 }
  0x59   : > { %v271_v16 = vmul.f32 0.3275911, %v267_v12  ;;  %v272_v18 = vmul.f32 0.3275911, %v268_v14  ;;  %v331_v28 = vsub.f32 0.0, %v267_v12  ;;  %v332_v34 = vsub.f32 0.0, %v268_v14 }
  0x5a   : > { %v274_v19 = vadd.f32 1.0, %v270_v15  ;;  %v273_v21 = vmul.f32 0.3275911, %v269_v17  ;;  %v334_v33 = vmul.f32 %v330_v25, %v266_v11  ;;  %v333_v39 = vsub.f32 0.0, %v269_v17  ;;  %s662_s7 = sshll.u32 %s253_s22, 4  ;;  %s650_s10 = scalar_lea.sflag [#allocation4], %s1208_s12  ;;  %s1367_s7 = int_to_ptr.vmem [resolvable:$true] %s662_s7 }
  0x5b   : > { %v275_v20 = vadd.f32 1.0, %v271_v16  ;;  %v276_v22 = vadd.f32 1.0, %v272_v18  ;;  %v335_v37 = vmul.f32 %v331_v28, %v267_v12  ;;  %v336_v47 = vmul.f32 %v332_v34, %v268_v14  ;;  %s940_s23 = scalar_lea.vmem %s1367_s7, 256  ;;  %p1427_p1 = scmp.ne.s32.totalorder %s1420_s27, 0 }
  0x5c   : > { %858 = vrcp.f32 %v274_v19  ;;  %v277_v23 = vadd.f32 1.0, %v273_v21  ;;  %v338_v45 = vmul.f32 1.442695, %v334_v33  ;;  %v337_v51 = vmul.f32 %v333_v39, %v269_v17  ;;  %p941_p12 = scmp.ne.s32.totalorder %s1367_s7, %s940_s23  ;;  %s1021_s25 = smov [#allocation7]  }
  0x5d   : > { %860 = vrcp.f32 %v275_v20  ;;  %v340_v49 = vmul.f32 1.442695, %v335_v37  ;;  %v342_v58 = vmul.f32 1.442695, %v336_v47  ;;  %s944_s11 = sshll.u32 %s1021_s25, 4  ;;  %s945_s11 = int_to_ptr.vmem [resolvable:$false] %s944_s11 }
  0x5e   : > { %862 = vrcp.f32 %v276_v22  ;;  %v344_v61 = vmul.f32 1.442695, %v337_v51  ;;  %p942_p13 = pnand %p941_p12, %p1427_p1  ;;  %s946_s29 = scalar_lea.vmem %s945_s11, 512 }
  0x5f   : > { %864 = vrcp.f32 %v277_v23  ;;  %p947_p5 = scmp.lt.s32.totalorder %s1367_s7, %s945_s11  ;;  %p948_p7 = scmp.lt.s32.totalorder %s946_s29, %s940_s23 }
  0x60   : > { %866 = vpow2.f32 %v338_v45  ;;  %p943_p9 = pneg %p942_p13 }
  0x61   : > { %868 = vpow2.f32 %v340_v49  ;;  %p949_p10 = por %p948_p7, %p947_p5 }
  0x62   : > { %870 = vpow2.f32 %v342_v58 }
  0x63   : > { %872 = vpow2.f32 %v344_v61  ;;  %p950_p11 = pnand %p949_p10, %p943_p9 }
  0x66   : > { %v859_v24 = vpop.eup %858 }
  0x67   : > { %v861_v26 = vpop.eup %860  ;;  %v282_v27 = vmul.f32 %v859_v24, %v274_v19 }
  0x68   : > { %v283_v29 = vmul.f32 %v861_v26, %v275_v20  ;;  %v863_v31 = vpop.eup %862 }
  0x69   : > { %v286_v30 = vsub.f32 2.0, %v282_v27  ;;  %v865_v35 = vpop.eup %864  ;;  %v284_v38 = vmul.f32 %v863_v31, %v276_v22 }
  0x6a   : > { %v287_v32 = vsub.f32 2.0, %v283_v29  ;;  %v285_v41 = vmul.f32 %v865_v35, %v277_v23  ;;  %v867_v23 = vpop.eup %866 }
  0x6b   : > { %v290_v36 = vmul.f32 %v859_v24, %v286_v30  ;;  %v288_v43 = vsub.f32 2.0, %v284_v38 }
  0x6c   : > { %v291_v40 = vmul.f32 %v861_v26, %v287_v32  ;;  %v289_v46 = vsub.f32 2.0, %v285_v41  ;;  %v869_v26 = vpop.eup %868 }
  0x6d   : > { %v294_v42 = vmul.f32 1.0614054, %v290_v36  ;;  %v292_v50 = vmul.f32 %v863_v31, %v288_v43  ;;  %v871_v33 = vpop.eup %870 }
  0x6e   : > { %v295_v44 = vmul.f32 1.0614054, %v291_v40  ;;  %v293_v53 = vmul.f32 %v865_v35, %v289_v46  ;;  %v873_v37 = vpop.eup %872  ;;  %v259_v46 = vmul.f32 0.5, %v1229_v4 }
  0x6f   : > { %v298_v48 = vadd.f32 -1.4531521, %v294_v42  ;;  %v296_v55 = vmul.f32 1.0614054, %v292_v50 }
  0x70   : > { %v299_v52 = vadd.f32 -1.4531521, %v295_v44  ;;  %v297_v57 = vmul.f32 1.0614054, %v293_v53 }
  0x71   : > { %v302_v54 = vmul.f32 %v298_v48, %v290_v36  ;;  %v300_v60 = vadd.f32 -1.4531521, %v296_v55  ;;  %v261_v55 = vmul.f32 0.5, %v1239_v8 }
  0x72   : > { %v303_v56 = vmul.f32 %v299_v52, %v291_v40  ;;  %v301_v63 = vadd.f32 -1.4531521, %v297_v57 }
  0x73   : > { %v306_v59 = vadd.f32 1.4214138, %v302_v54  ;;  %v304_v2 = vmul.f32 %v300_v60, %v292_v50 }
  0x74   : > { %v307_v62 = vadd.f32 1.4214138, %v303_v56  ;;  %v305_v11 = vmul.f32 %v301_v63, %v293_v53 }
  0x75   : > { %v310_v1 = vmul.f32 %v306_v59, %v290_v36  ;;  %v308_v14 = vadd.f32 1.4214138, %v304_v2 }
  0x76   : > { %v311_v10 = vmul.f32 %v307_v62, %v291_v40  ;;  %v309_v16 = vadd.f32 1.4214138, %v305_v11 }
  0x77   : > { %v314_v12 = vadd.f32 -0.28449672, %v310_v1  ;;  %v312_v18 = vmul.f32 %v308_v14, %v292_v50 }
  0x78   : > { %v315_v15 = vadd.f32 -0.28449672, %v311_v10  ;;  %v313_v20 = vmul.f32 %v309_v16, %v293_v53 }
  0x79   : > { %v318_v17 = vmul.f32 %v314_v12, %v290_v36  ;;  %v316_v22 = vadd.f32 -0.28449672, %v312_v18 }
  0x7a   : > { %v319_v19 = vmul.f32 %v315_v15, %v291_v40  ;;  %v317_v25 = vadd.f32 -0.28449672, %v313_v20 }
  0x7b   : > { %v322_v21 = vadd.f32 0.2548296, %v318_v17  ;;  %v320_v28 = vmul.f32 %v316_v22, %v292_v50 }
  0x7c   : > { %v323_v24 = vadd.f32 0.2548296, %v319_v19  ;;  %v321_v30 = vmul.f32 %v317_v25, %v293_v53 }
  0x7d   : > { %v326_v27 = vmul.f32 %v322_v21, %v290_v36  ;;  %v324_v32 = vadd.f32 0.2548296, %v320_v28  ;;  %v258_v36 = vmul.f32 0.5, %v1227_v3 }
  0x7e   : > { %v327_v29 = vmul.f32 %v323_v24, %v291_v40  ;;  %v325_v35 = vadd.f32 0.2548296, %v321_v30 }
  0x7f   : > { %v346_v31 = vmul.f32 %v867_v23, %v326_v27  ;;  %v328_v39 = vmul.f32 %v324_v32, %v292_v50 }
  0x80   : > { %v347_v34 = vmul.f32 %v869_v26, %v327_v29  ;;  %v329_v42 = vmul.f32 %v325_v35, %v293_v53  ;;  %v260_v53 = vmul.f32 0.5, %v1231_v5  ;;  %v374_v5 = vld [vmem:[%s1412_s2] sm:$0xff] }
  0x81   : > { %v350_v38 = vsub.f32 1.0, %v346_v31  ;;  %v348_v44 = vmul.f32 %v871_v33, %v328_v39 }
  0x82   : > { %v351_v41 = vsub.f32 1.0, %v347_v34  ;;  %v349_v45 = vmul.f32 %v873_v37, %v329_v42  ;;  %v488_v34 = vlaneseq }
  0x83   : > { %v358_v43 = vsub.f32 0.0, %v350_v38  ;;  %v352_v48 = vsub.f32 1.0, %v348_v44  ;;  %v493_v44 = vld [vmem:[%s1220_s20] sm:$0xff] }
  0x84   : > { %v359_v40 = vsub.f32 0.0, %v351_v41  ;;  %v353_v52 = vsub.f32 1.0, %v349_v45  ;;  %v1266_v35 = vshrl.u32 %v488_v34, 7  ;;  %v495_v45 = vmax.f32 %v493_v44, 0.0 }
  0x85   : > { %v362_v47 = vsel %vm354_vm1, %v358_v43, %v350_v38  ;;  %v360_v6 = vsub.f32 0.0, %v352_v48 }
  0x86   : > { %v363_v49 = vsel %vm355_vm2, %v359_v40, %v351_v41  ;;  %v366_v51 = vadd.f32 1.0, %v362_v47  ;;  %v361_v54 = vsub.f32 0.0, %v353_v52  ;;  %v490_v41 = vsub.s32 0, %v1266_v35 }
  0x87   : > { %v367_v50 = vadd.f32 1.0, %v363_v49  ;;  %v364_v56 = vsel %vm356_vm3, %v360_v6, %v352_v48  ;;  %v511_v49 = vsub.s32 1, %v1266_v35  ;;  %v551_v6 = vsub.s32 3, %v1266_v35 }
  0x88   : > { %v370_v7 = vmul.f32 %v366_v51, %v258_v36  ;;  %v365_v4 = vsel %vm357_vm4, %v361_v54, %v353_v52  ;;  %v368_v57 = vadd.f32 1.0, %v364_v56  ;;  %v494_v36 = vld [vmem:[%s1220_s20 + $0x8] sm:$0xff]  ;;  %v530_v51 = vsub.s32 2, %v1266_v35 }
  0x89   : > { %v371_v3 = vmul.f32 %v367_v50, %v259_v46  ;;  %v369_v59 = vadd.f32 1.0, %v365_v4  ;;  %v496_v46 = vmax.f32 %v494_v36, 0.0  ;;  %v1277_v52 = vmin.f32 %v495_v45, 0.99999 }
  0x8a   : > { %v372_v60 = vmul.f32 %v368_v57, %v260_v53  ;;  %v572_v53 = vsub.s32 4, %v1266_v35  ;;  %v593_v54 = vsub.s32 5, %v1266_v35 }
  0x8b   : > { %v791_v58 = vpack.c.bf16 %v371_v3, %v370_v7  ;;  %v373_v61 = vmul.f32 %v369_v59, %v261_v55  ;;  %v1279_v50 = vmin.f32 %v496_v46, 0.99999  ;;  %vm526_vm7 = vcmp.ge.f32.partialorder %v1277_v52, 0.14285715 }
  0x8c   : > { %vm547_vm9 = vcmp.ge.f32.partialorder %v1277_v52, 0.2857143  ;;  %vm568_vm11 = vcmp.ge.f32.partialorder %v1277_v52, 0.42857143  ;;  %vm589_vm13 = vcmp.ge.f32.partialorder %v1277_v52, 0.5714286 }
  0x8d   : > { %792 = vmatpush3.bf16.msra.mxu0 %v791_v58  ;;  %v794_v9 = vpack.c.bf16 %v373_v61, %v372_v60  ;;  %vm527_vm8 = vcmp.ge.f32.partialorder %v1279_v50, 0.14285715  ;;  %v614_v60 = vsub.s32 6, %v1266_v35  ;;  %vm548_vm10 = vcmp.ge.f32.partialorder %v1279_v50, 0.2857143 }
  0x8e   : > { %793 = vmatprep.subr.bf16.mxu0 %v1017_v0  ;;  %vm569_vm12 = vcmp.ge.f32.partialorder %v1279_v50, 0.42857143  ;;  %vm590_vm14 = vcmp.ge.f32.partialorder %v1279_v50, 0.5714286  ;;  %vm610_vm15 = vcmp.ge.f32.partialorder %v1277_v52, 0.71428573 }
  0x8f   : > { %vm611_vm0 = vcmp.ge.f32.partialorder %v1279_v50, 0.71428573  ;;  %vm631_vm1 = vcmp.ge.f32.partialorder %v1277_v52, 0.85714287  ;;  %vm632_vm2 = vcmp.ge.f32.partialorder %v1279_v50, 0.85714287 }
  0x91   : > { %795 = vmatpush3.bf16.msra.mxu0 %v794_v9 }
  0x94   : > { %788 = vmatmul.mubr.msk.f32.vlgmr.msra.gmra.mrb[0].mxu0 %vm381_vm5, %v374_v5 }
  0xd5   : > { %v379_v13 = vpop.permute.xlu0 %378 }
 0x167   : > { %v451_v8 = vpop.f32.mrb[0].mxu0 }
 0x168   : > { %v452_v62 = vadd.f32 %v451_v8, %v379_v13  ;;  %v789_v63 = vpop.f32.mrb[1].mxu0 }
 0x16a   : > { %v456_v1 = vand.u32 2147483647, %v452_v62  ;;  %v455_v19 = vmax.f32 %v452_v62, 0.0 }
 0x16c   : > { %v457_v2 = vsub.f32 0.0, %v456_v1 }
 0x16e   : > { %v458_v10 = vmul.f32 1.442695, %v457_v2 }
 0x170   : > { %874 = vpow2.f32 %v458_v10 }
 0x17a   : > { %v875_v11 = vpop.eup %874 }
 0x17b   : > { %v460_v12 = vadd.f32 1.0, %v875_v11  ;;  %v463_v0 = vmul.f32 -0.5, %v875_v11  ;;  %v466_v15 = vand.u32 2147483647, %v875_v11 }
 0x17d   : > { %876 = vlog2.f32 %v460_v12  ;;  %v464_v14 = vadd.f32 1.0, %v463_v0  ;;  %vm467_vm6 = vcmp.lt.f32.partialorder %v466_v15, 0.0004427343 }
 0x17f   : > { %v465_v18 = vmul.f32 %v875_v11, %v464_v14 }
 0x187   : > { %v877_v16 = vpop.eup %876 }
 0x188   : > { %v462_v17 = vmul.f32 0.6931472, %v877_v16 }
 0x18a   : > { %v468_v20 = vsel %vm467_vm6, %v465_v18, %v462_v17 }
 0x18b   : > { %v469_v21 = vadd.f32 %v468_v20, %v455_v19 }
 0x18d   : > { %v470_v22 = vmax.f32 %v469_v21, 0.01 }
 0x18f   : > { %v471_v23 = vrot.slane %v470_v22, 4  ;;  %v478_v25 = vrot.slane %v470_v22, 7 }
 0x191   : > { %v472_v24 = vadd.f32 %v471_v23, %v470_v22  ;;  %v480_v28 = vadd.f32 %v478_v25, %v470_v22 }
 0x193   : > { %v473_v26 = vrot.slane %v472_v24, 2  ;;  %v481_v31 = vmul.f32 0.5, %v480_v28 }
 0x195   : > { %v474_v27 = vadd.f32 %v473_v26, %v472_v24 }
 0x197   : > { %v475_v29 = vrot.slane %v474_v27, 1 }
 0x199   : > { %v476_v30 = vadd.f32 %v475_v29, %v474_v27 }
 0x19b   : > { %v482_v32 = vsub.f32 %v476_v30, %v481_v31 }
 0x19d   : > { %v483_v33 = vmul.f32 0.14285715, %v482_v32 }
 0x19f   : > { %878 = vrcp.f32 %v483_v33 }
 0x1a9   : > { %v879_v37 = vpop.eup %878 }
 0x1aa   : > { %v485_v38 = vmul.f32 %v879_v37, %v483_v33 }
 0x1ac   : > { %v486_v39 = vsub.f32 2.0, %v485_v38 }
 0x1ae   : > { %v487_v42 = vmul.f32 %v879_v37, %v486_v39 }
 0x1b0   : > { %v491_v43 = vrot.slane %v487_v42, %v490_v41 }
 0x1b2   : > { %v1271_v40 = vmul.f32 %v491_v43, %v470_v22 }
 0x1b4   : > { %v500_v47 = vrot.slane %v1271_v40, 7 }
 0x1b6   : > { %v502_v48 = vsub.f32 %v1271_v40, %v500_v47 }
 0x1b8   : > { %v1282_v7 = vmul.f32 7.0, %v502_v48 }
 0x1ba   : > { %v504_v3 = vmul.f32 0.0, %v1282_v7  ;;  %v512_v55 = vrot.slane %v1282_v7, %v511_v49  ;;  %v521_v56 = vmul.f32 0.14285715, %v1282_v7  ;;  %v531_v4 = vrot.slane %v1282_v7, %v530_v51 }
 0x1bb   : > { %v542_v57 = vmul.f32 0.2857143, %v1282_v7  ;;  %v552_v58 = vrot.slane %v1282_v7, %v551_v6  ;;  %v563_v59 = vmul.f32 0.42857143, %v1282_v7  ;;  %v573_v62 = vrot.slane %v1282_v7, %v572_v53 }
 0x1bc   : > { %v506_v61 = vrot.slane %v504_v3, 1  ;;  %v523_v9 = vrot.slane %v521_v56, 1  ;;  %v513_v5 = vmul.f32 %v512_v55, %v1277_v52  ;;  %v514_v13 = vmul.f32 %v512_v55, %v1279_v50 }
 0x1bd   : > { %v544_v8 = vrot.slane %v542_v57, 1  ;;  %v532_v2 = vmul.f32 %v531_v4, %v1277_v52  ;;  %v565_v10 = vrot.slane %v563_v59, 1  ;;  %v533_v11 = vmul.f32 %v531_v4, %v1279_v50 }
 0x1be   : > { %v508_v63 = vsub.f32 %v1271_v40, %v506_v61  ;;  %v525_v1 = vsub.f32 %v1271_v40, %v523_v9  ;;  %v553_v0 = vmul.f32 %v552_v58, %v1277_v52  ;;  %v584_v14 = vmul.f32 0.5714286, %v1282_v7 }
 0x1bf   : > { %v546_v12 = vsub.f32 %v1271_v40, %v544_v8  ;;  %v554_v17 = vmul.f32 %v552_v58, %v1279_v50  ;;  %v567_v18 = vsub.f32 %v1271_v40, %v565_v10  ;;  %v594_v21 = vrot.slane %v1282_v7, %v593_v54 }
 0x1c0   : > { %v518_v15 = vrot.slane %v508_v63, %v490_v41  ;;  %v537_v16 = vrot.slane %v525_v1, %v511_v49  ;;  %v586_v20 = vrot.slane %v584_v14, 1  ;;  %v605_v22 = vmul.f32 0.71428573, %v1282_v7 }
 0x1c1   : > { %v558_v19 = vrot.slane %v546_v12, %v530_v51  ;;  %v579_v29 = vrot.slane %v567_v18, %v551_v6  ;;  %v574_v33 = vmul.f32 %v573_v62, %v1277_v52  ;;  %v575_v34 = vmul.f32 %v573_v62, %v1279_v50 }
 0x1c2   : > { %v519_v23 = vadd.f32 %v518_v15, %v513_v5  ;;  %v520_v24 = vadd.f32 %v518_v15, %v514_v13  ;;  %v538_v25 = vadd.f32 %v537_v16, %v532_v2  ;;  %v539_v26 = vadd.f32 %v537_v16, %v533_v11 }
 0x1c3   : > { %v559_v27 = vadd.f32 %v558_v19, %v553_v0  ;;  %v560_v28 = vadd.f32 %v558_v19, %v554_v17  ;;  %v588_v30 = vsub.f32 %v1271_v40, %v586_v20  ;;  %v615_v39 = vrot.slane %v1282_v7, %v614_v60 }
 0x1c4   : > { %v540_v31 = vsel %vm526_vm7, %v538_v25, %v519_v23  ;;  %v541_v32 = vsel %vm527_vm8, %v539_v26, %v520_v24  ;;  %v635_v41 = vsub.s32 7, %v1266_v35  ;;  %v580_v42 = vadd.f32 %v579_v29, %v574_v33 }
 0x1c5   : > { %v561_v37 = vsel %vm547_vm9, %v559_v27, %v540_v31  ;;  %v562_v38 = vsel %vm548_vm10, %v560_v28, %v541_v32  ;;  %v581_v43 = vadd.f32 %v579_v29, %v575_v34  ;;  %v600_v44 = vrot.slane %v588_v30, %v572_v53 }
 0x1c6   : > { %v607_v36 = vrot.slane %v605_v22, 1  ;;  %v595_v45 = vmul.f32 %v594_v21, %v1277_v52  ;;  %v596_v46 = vmul.f32 %v594_v21, %v1279_v50  ;;  %v626_v47 = vmul.f32 0.85714287, %v1282_v7 }
 0x1c7   : > { %v582_v48 = vsel %vm568_vm11, %v580_v42, %v561_v37  ;;  %v583_v49 = vsel %vm569_vm12, %v581_v43, %v562_v38  ;;  %v636_v55 = vrot.slane %v1282_v7, %v635_v41  ;;  %v616_v56 = vmul.f32 %v615_v39, %v1277_v52 }
 0x1c8   : > { %v609_v51 = vsub.f32 %v1271_v40, %v607_v36  ;;  %v601_v6 = vadd.f32 %v600_v44, %v595_v45  ;;  %v602_v53 = vadd.f32 %v600_v44, %v596_v46  ;;  %v628_v3 = vrot.slane %v626_v47, 1 }
 0x1c9   : > { %v617_v4 = vmul.f32 %v615_v39, %v1279_v50  ;;  %v637_v5 = vmul.f32 %v636_v55, %v1277_v52  ;;  %v638_v13 = vmul.f32 %v636_v55, %v1279_v50 }
 0x1ca   : > { %v621_v57 = vrot.slane %v609_v51, %v593_v54  ;;  %v603_v58 = vsel %vm589_vm13, %v601_v6, %v582_v48  ;;  %v604_v59 = vsel %vm590_vm14, %v602_v53, %v583_v49  ;;  %v630_v61 = vsub.f32 %v1271_v40, %v628_v3 }
 0x1cc   : > { %v622_v9 = vadd.f32 %v621_v57, %v616_v56  ;;  %v623_v7 = vadd.f32 %v621_v57, %v617_v4  ;;  %v642_v54 = vrot.slane %v630_v61, %v614_v60 }
 0x1ce   : > { %v624_v8 = vsel %vm610_vm15, %v622_v9, %v603_v58  ;;  %v625_v62 = vsel %vm611_vm0, %v623_v7, %v604_v59  ;;  %v643_v40 = vadd.f32 %v642_v54, %v637_v5  ;;  %v644_v63 = vadd.f32 %v642_v54, %v638_v13 }
 0x1d0   : > { %v645_v35 = vsel %vm631_vm1, %v643_v40, %v624_v8  ;;  %v646_v60 = vsel %vm632_vm2, %v644_v63, %v625_v62 }
 0x1d1   : > { %647 = vst [vmem:[%s253_s22] sm:$0xff] %v645_v35  ;;  %648 = vst [vmem:[%s253_s22 + $0x8] sm:$0xff] %v646_v60 }
 0x1d2   : > { %953 = shalt.err (!%p950_p11)
}
 0x1d3   : > { %s954_s14 = scalar_lea.hbm %s1365_s13, 256  ;;  %s958_s5 = scalar_lea.hbm %s1414_s4, 1024 }
 0x1d4   : > { %p955_p3 = scmp.ne.s32.totalorder %s1365_s13, %s954_s14  ;;  %p959_p2 = scmp.lt.u32.totalorder %s1365_s13, %s1414_s4 }
 0x1d5   : > { %p960_p4 = scmp.lt.u32.totalorder %s958_s5, %s954_s14  ;;  %p962_p12 = scmp.lt.u32.totalorder %s954_s14, %s1365_s13 }
 0x1d6   : > { %p956_p8 = pnand %p955_p3, %p1427_p1 }
 0x1d7   : > { %p961_p6 = por %p960_p4, %p959_p2 }
 0x1d8   : > { %p957_p0 = pneg %p956_p8 }
 0x1d9   : > { %p963_p13 = por %p962_p12, %p961_p6 }
 0x1db   : > { %p964_p9 = pnand %p963_p13, %p957_p0 }
 0x1dd   : > { %967 = shalt.err (!%p964_p9)
}
 0x1de   : > { %s1022_s8 = smov 128   ;;  %s1023_s22 = smov 512  }
 0x1df   : > { %s1024_s19 = smov 8  }
 0x1e0   : > { %800 = dma.vmem_to_hbm [thread:$0]  (%p1427_p1), %s1367_s7, 256, %s1365_s13, %s650_s10, %s1022_s8, %s1023_s22, %s1024_s19  }
 0x1e1 PF: > { %p814_p5 = scmp.ge.s32.totalorder %s1010_s18, 2  ;;  %s677_s30 = sand.u32 1, %s998_s15  }
 0x1e2   : > { %p1428_p7 = scmp.ne.s32.totalorder %s1421_s28, 0  ;;  %s678_s23 = scalar_lea.sflag [#allocation4], %s677_s30 }
 0x1e4   : > { %p810_p10 = pnand %p814_p5, %p1428_p7 }
 0x1e6   : > { %993 = dma.done.wait (!%p810_p10), %s678_s23, 256  }
 0x1e7   : > { %995 = vsyncadd (!%p810_p10), %s678_s23, 4294967040  ;;  %p20_p11 = scmp.ge.s32.totalorder %s1075_s21, 6   ;;  %s1429_s15 = smov %s1002_s16 }
 0x1e8   : > { %s1430_s16 = smov %s1006_s17  ;;  %s1431_s17 = smov %s1087_s24 }
 0x1e9   : > { %s1432_s18 = smov %s1075_s21  ;;  %22 = sbr.rel (!%p20_p11) target bundleno = 7 (0x7), region = 94 }
 0x1f0   :  { %683 = vsyncpa [#allocation3], 1 }
 0x1f1   :  { %685 = vsyncpa [#allocation3 + $0x1], 1 }
 0x1f2   :  { %686 = vsyncpa [#allocation6], 1 }
 0x1f3   :  { %688 = vsyncpa [#allocation6 + $0x1], 1 }
 0x1f4   :  { %689 = vsyncpa [#allocation4], 1 }
 0x1f5   :  { %691 = vsyncpa [#allocation4 + $0x1], 1 }

</bundles_post_ra>
